<compile_context>
chip_gen: v7x
topology: tpu7x:2x2x1
jax: 0.10.0
libtpu: 0.0.40
codegen_flags: <defaults>
</compile_context>

<pallas_src>
import functools

import jax
import jax.numpy as jnp
from jax import lax
from jax.experimental import pallas as pl
from jax.experimental.pallas import tpu as pltpu


def _layernorm(x, gamma, beta, eps=1e-5):
    mu = jnp.mean(x, axis=-1, keepdims=True)
    xc = x - mu
    var = jnp.mean(xc * xc, axis=-1, keepdims=True)
    inv = lax.rsqrt(var + eps)
    return xc * inv * gamma + beta


def _attn_kernel(num_heads, head_dim,
                 q_ref, qape_ref, apos_ref, kt_ref, vp_ref,
                 g1q_ref, b1q_ref, wq_ref, bp_ref,
                 out_ref):
    C = num_heads * head_dim

    q_in = q_ref[0]                                               # (TQ, C) f32
    qn = _layernorm(q_in, g1q_ref[0], b1q_ref[0])
    # softmax scale already folded into Wq; q_ape projection is an additive bias.
    qp = jnp.dot(qn.astype(jnp.bfloat16), wq_ref[...],
                 preferred_element_type=jnp.float32) + qape_ref[...]
    qp = qp.astype(jnp.bfloat16)

    acc = jnp.zeros((q_in.shape[0], C), jnp.float32)
    # Heads are few and static in SwinTrack, so this unrolls at trace time.
    # TODO(synk): a lax.fori_loop over heads would bound the (TQ, L_kv) temporaries'
    # live ranges, but it needs a dynamic lane-offset slice of qp which does not
    # lower cleanly on Mosaic; each head's temporaries are consumed within its
    # iteration and vmem_limit_bytes is set with headroom.
    for h in range(num_heads):
        lo = h * head_dim
        hi = lo + head_dim
        qh = qp[:, lo:hi]                                         # (TQ,  hd) bf16
        kt_h = kt_ref[0, lo:hi, :]                                # (hd, Lkv) bf16 (sublane slice)

        s = jnp.dot(qh, kt_h, preferred_element_type=jnp.float32)  # (TQ, Lkv) f32
        s = s + apos_ref[0, h].astype(jnp.float32)                 # bf16 stream, f32 add
        s = s - jnp.max(s, axis=-1, keepdims=True)
        p = jnp.exp(s)
        # TODO(synk): approx reciprocal + bf16 probabilities — re-validate tolerance
        # at production L_kv / attn_pos magnitudes.
        p = p * pl.reciprocal(jnp.sum(p, axis=-1, keepdims=True), approx=True)

        # V' already carries the output projection: one full-lane-width matmul,
        # accumulator stays lane-dense (TQ, C).
        acc = acc + jnp.dot(p.astype(jnp.bfloat16), vp_ref[0, h],
                            preferred_element_type=jnp.float32)

    out_ref[0] = q_in + acc + bp_ref[...]


def _q_tiling(Lq, preferred):
    """Pick (tile, padded L_q). Preferred = 256 (v6e/v7x MXU) or 128 (v5e)."""
    for t in (preferred, 256, 128):
        if t <= Lq and Lq % t == 0:
            return t, Lq
    if Lq <= 128:
        tq = max(8, ((Lq + 7) // 8) * 8)          # single sublane-aligned tile
        return tq, tq
    lq_pad = ((Lq + 127) // 128) * 128            # pad instead of one huge tile
    tq = preferred if lq_pad % preferred == 0 else 128
    return tq, lq_pad


def cross_attention_block(q, kv, q_ape, k_ape, attn_pos, params, num_heads,
                          *, q_tile=256):
    """SwinTrack CrossAttentionBlock forward. Pass q_tile=128 on TPU v5e."""
    B, Lq, C = q.shape
    Lkv = kv.shape[1]
    hd = C // num_heads
    scale = hd ** -0.5
    f32, bf16 = jnp.float32, jnp.bfloat16

    # ---- KV stage, hoisted out of the grid (review item) ---------------------
    # LN(kv), K/V projections, k_ape fold, K pre-transpose and the per-head Wp
    # fold run once per batch element in plain XLA; the attention kernel then
    # streams only bf16 K^T and V'.
    kvn = _layernorm(kv.astype(f32), params["g1k"][0].astype(f32),
                     params["b1k"][0].astype(f32))
    k = (kvn + k_ape.astype(f32)) @ params["wk"].astype(f32)          # (B, Lkv, C)
    v = kvn @ params["wv"].astype(f32)                                # (B, Lkv, C)
    kt = jnp.swapaxes(k, 1, 2).astype(bf16)                           # (B, C, Lkv)
    vp = jnp.einsum("blhd,hdc->bhlc",
                    v.reshape(B, Lkv, num_heads, hd),
                    params["wp"].astype(f32).reshape(num_heads, hd, C)
                    ).astype(bf16)                                    # (B, H, Lkv, C)

    # ---- q-side constants -----------------------------------------------------
    wq_s = params["wq"].astype(f32) * scale            # fold softmax scale into Wq
    qape_proj = q_ape[0].astype(f32) @ wq_s            # (Lq, C) additive bias
    wq_b = wq_s.astype(bf16)
    bp = params["bp"].astype(f32)
    g1q = params["g1q"].astype(f32)
    b1q = params["b1q"].astype(f32)

    # ---- L_q tiling / padding -------------------------------------------------
    tq, lq_pad = _q_tiling(Lq, q_tile)
    q_f = q.astype(f32)
    apos = attn_pos.astype(f32)
    if lq_pad != Lq:
        pad = lq_pad - Lq
        q_f = jnp.pad(q_f, ((0, 0), (0, pad), (0, 0)))
        qape_proj = jnp.pad(qape_proj, ((0, pad), (0, 0)))
        apos = jnp.pad(apos, ((0, 0), (0, 0), (0, pad), (0, 0)))
    apos = apos.astype(bf16)   # bf16 stream halves the dominant DMA / VMEM block

    # Grid: L_q tiles OUTER, batch INNER -> attn_pos / q_ape blocks (index depends
    # only on i) are re-used across the whole batch instead of re-streamed B times.
    grid = (lq_pad // tq, B)

    # Explicit VMEM budget (default scoped limit is only 16/32 MiB).
    blk = (2 * tq * C * 4                      # q (double-buffered)
           + 2 * tq * C * 4                    # q_ape bias
           + 2 * num_heads * tq * Lkv * 2      # attn_pos (bf16)
           + 2 * C * Lkv * 2                   # K^T (bf16)
           + 2 * num_heads * Lkv * C * 2       # V'  (bf16)
           + 2 * (C * C * 2 + 4 * C * 4)       # weights / LN params / bias
           + 2 * tq * C * 4)                   # out
    temps = 6 * tq * C * 4 + 4 * tq * Lkv * 4
    vmem_limit = int(min(100 * 1024 * 1024,
                         max(32 * 1024 * 1024, blk + temps + (8 << 20))))

    kernel = functools.partial(_attn_kernel, num_heads, hd)

    def _const(shape):
        # Grid-invariant operands.  (A further v7x refinement would single-buffer
        # these via pipeline_mode=pl.Buffered(1); kept default here.)
        return pl.BlockSpec(shape, lambda i, b: tuple(0 for _ in shape))

    out = pl.pallas_call(
        kernel,
        out_shape=jax.ShapeDtypeStruct((B, lq_pad, C), f32),
        grid=grid,
        in_specs=[
            pl.BlockSpec((1, tq, C), lambda i, b: (b, i, 0)),              # q
            pl.BlockSpec((tq, C), lambda i, b: (i, 0)),                    # q_ape @ (s*Wq)
            pl.BlockSpec((1, num_heads, tq, Lkv),
                         lambda i, b: (0, 0, i, 0)),                       # attn_pos bf16
            pl.BlockSpec((1, C, Lkv), lambda i, b: (b, 0, 0)),             # K^T  bf16
            pl.BlockSpec((1, num_heads, Lkv, C),
                         lambda i, b: (b, 0, 0, 0)),                       # V'   bf16
            _const((1, C)),                                                # norm1_q gamma
            _const((1, C)),                                                # norm1_q beta
            _const((C, C)),                                                # Wq*scale bf16
            _const((1, C)),                                                # bproj
        ],
        out_specs=pl.BlockSpec((1, tq, C), lambda i, b: (b, i, 0)),
        compiler_params=pltpu.CompilerParams(
            dimension_semantics=("parallel", "parallel"),
            vmem_limit_bytes=vmem_limit),
    )(q_f, qape_proj, apos, kt, vp, g1q, b1q, wq_b, bp)

    if lq_pad != Lq:
        out = out[:, :Lq, :]
    return out


def reference(q, kv, q_ape, k_ape, attn_pos, params, num_heads):
    """Pure-JAX f32 reference mirroring the PyTorch module."""
    B, Lq, C = q.shape
    Lkv = kv.shape[1]
    hd = C // num_heads
    scale = hd ** -0.5

    qn = _layernorm(q, params["g1q"][0], params["b1q"][0])
    kvn = _layernorm(kv, params["g1k"][0], params["b1k"][0])

    qp = (qn + q_ape) @ params["wq"]
    kp = (kvn + k_ape) @ params["wk"]
    vp = kvn @ params["wv"]

    qh = qp.reshape(B, Lq, num_heads, hd).transpose(0, 2, 1, 3)
    kh = kp.reshape(B, Lkv, num_heads, hd).transpose(0, 2, 1, 3)
    vh = vp.reshape(B, Lkv, num_heads, hd).transpose(0, 2, 1, 3)

    attn = jnp.einsum("bhqd,bhkd->bhqk", qh, kh) * scale + attn_pos
    attn = jax.nn.softmax(attn, axis=-1)
    x = jnp.einsum("bhqk,bhkd->bhqd", attn, vh)
    x = x.transpose(0, 2, 1, 3).reshape(B, Lq, C)
    x = x @ params["wp"] + params["bp"][0]
    return q + x


if __name__ == "__main__":
    B, Lq, Lkv, C, H = 2, 8, 16, 32, 4

    key = jax.random.PRNGKey(0)
    keys = jax.random.split(key, 16)

    q = jax.random.normal(keys[0], (B, Lq, C), jnp.float32)
    kv = jax.random.normal(keys[1], (B, Lkv, C), jnp.float32)
    q_ape = jax.random.normal(keys[2], (1, Lq, C), jnp.float32)
    k_ape = jax.random.normal(keys[3], (1, Lkv, C), jnp.float32)
    attn_pos = jax.random.normal(keys[4], (1, H, Lq, Lkv), jnp.float32)

    params = {
        "g1q": jnp.ones((1, C), jnp.float32),
        "b1q": jnp.zeros((1, C), jnp.float32),
        "g1k": jnp.ones((1, C), jnp.float32),
        "b1k": jnp.zeros((1, C), jnp.float32),
        # stored as (in_features, out_features) == W.T of nn.Linear
        "wq": 0.05 * jax.random.normal(keys[5], (C, C), jnp.float32),
        "wk": 0.05 * jax.random.normal(keys[6], (C, C), jnp.float32),
        "wv": 0.05 * jax.random.normal(keys[7], (C, C), jnp.float32),
        "wp": 0.05 * jax.random.normal(keys[8], (C, C), jnp.float32),
        "bp": 0.01 * jax.random.normal(keys[9], (1, C), jnp.float32),
    }

    out = cross_attention_block(q, kv, q_ape, k_ape, attn_pos, params, H)
    out = jax.block_until_ready(out)

    ref = reference(q, kv, q_ape, k_ape, attn_pos, params, H)
    assert out.shape == (B, Lq, C)
    # bf16 MXU operands + bf16 attn_pos stream + approx reciprocal => loosened tol.
    assert jnp.allclose(out, ref, atol=2e-2, rtol=2e-2), \
        f"max err {jnp.max(jnp.abs(out - ref))}"

    print("KERNEL_OK")
</pallas_src>

<mosaic_0001>
module attributes {stable_mosaic.version = 11 : i64} {
  func.func @_attn_kernel(%arg0: i32, %arg1: i32, %arg2: memref<1x8x32xf32, #tpu.memory_space<vmem>>, %arg3: memref<8x32xf32, #tpu.memory_space<vmem>>, %arg4: memref<1x4x8x16xbf16, #tpu.memory_space<vmem>>, %arg5: memref<1x32x16xbf16, #tpu.memory_space<vmem>>, %arg6: memref<1x4x16x32xbf16, #tpu.memory_space<vmem>>, %arg7: memref<1x32xf32, #tpu.memory_space<vmem>>, %arg8: memref<1x32xf32, #tpu.memory_space<vmem>>, %arg9: memref<32x32xbf16, #tpu.memory_space<vmem>>, %arg10: memref<1x32xf32, #tpu.memory_space<vmem>>, %arg11: memref<1x8x32xf32, #tpu.memory_space<vmem>>) attributes {dimension_semantics = [#tpu.dimension_semantics<parallel>, #tpu.dimension_semantics<parallel>], iteration_bounds = array<i64: 1, 2>, scalar_prefetch = 0 : i64, scratch_operands = 0 : i64, tpu.core_type = #tpu.core_type<tc>, window_params = [{transform_indices = @transform_0, window_bounds = array<i64: 1, 8, 32>}, {transform_indices = @transform_1, window_bounds = array<i64: 8, 32>}, {transform_indices = @transform_2, window_bounds = array<i64: 1, 4, 8, 16>}, {transform_indices = @transform_3, window_bounds = array<i64: 1, 32, 16>}, {transform_indices = @transform_4, window_bounds = array<i64: 1, 4, 16, 32>}, {pipeline_mode = #tpu.pipeline_mode<synchronous>, transform_indices = @transform_5, window_bounds = array<i64: 1, 32>}, {pipeline_mode = #tpu.pipeline_mode<synchronous>, transform_indices = @transform_6, window_bounds = array<i64: 1, 32>}, {pipeline_mode = #tpu.pipeline_mode<synchronous>, transform_indices = @transform_7, window_bounds = array<i64: 32, 32>}, {pipeline_mode = #tpu.pipeline_mode<synchronous>, transform_indices = @transform_8, window_bounds = array<i64: 1, 32>}, {transform_indices = @transform_9, window_bounds = array<i64: 1, 8, 32>}]} {
    %c0 = arith.constant 0 : index
    %c0_0 = arith.constant 0 : index
    %c0_1 = arith.constant 0 : index
    %0 = vector.load %arg2[%c0, %c0_0, %c0_1] : memref<1x8x32xf32, #tpu.memory_space<vmem>>, vector<1x8x32xf32>
    %1 = vector.shape_cast %0 : vector<1x8x32xf32> to vector<8x32xf32>
    %c0_2 = arith.constant 0 : index
    %c0_3 = arith.constant 0 : index
    %2 = vector.load %arg7[%c0_2, %c0_3] : memref<1x32xf32, #tpu.memory_space<vmem>>, vector<1x32xf32>
    %3 = vector.shape_cast %2 : vector<1x32xf32> to vector<32xf32>
    %c0_4 = arith.constant 0 : index
    %c0_5 = arith.constant 0 : index
    %4 = vector.load %arg8[%c0_4, %c0_5] : memref<1x32xf32, #tpu.memory_space<vmem>>, vector<1x32xf32>
    %5 = vector.shape_cast %4 : vector<1x32xf32> to vector<32xf32>
    %cst = arith.constant dense<0.000000e+00> : vector<8xf32>
    %6 = vector.multi_reduction <add>, %1, %cst [1] : vector<8x32xf32> to vector<8xf32>
    %7 = vector.shape_cast %6 : vector<8xf32> to vector<8x1xf32>
    %cst_6 = arith.constant 3.200000e+01 : f32
    %8 = vector.broadcast %cst_6 : f32 to vector<8x1xf32>
    %9 = arith.divf %7, %8 : vector<8x1xf32>
    %10 = vector.broadcast %9 : vector<8x1xf32> to vector<8x32xf32>
    %11 = arith.subf %1, %10 : vector<8x32xf32>
    %12 = arith.mulf %11, %11 : vector<8x32xf32>
    %cst_7 = arith.constant dense<0.000000e+00> : vector<8xf32>
    %13 = vector.multi_reduction <add>, %12, %cst_7 [1] : vector<8x32xf32> to vector<8xf32>
    %14 = vector.shape_cast %13 : vector<8xf32> to vector<8x1xf32>
    %cst_8 = arith.constant 3.200000e+01 : f32
    %15 = vector.broadcast %cst_8 : f32 to vector<8x1xf32>
    %16 = arith.divf %14, %15 : vector<8x1xf32>
    %cst_9 = arith.constant 9.99999974E-6 : f32
    %17 = vector.broadcast %cst_9 : f32 to vector<8x1xf32>
    %18 = arith.addf %16, %17 : vector<8x1xf32>
    %19 = math.rsqrt %18 : vector<8x1xf32>
    %20 = vector.broadcast %19 : vector<8x1xf32> to vector<8x32xf32>
    %21 = arith.mulf %11, %20 : vector<8x32xf32>
    %22 = vector.shape_cast %3 : vector<32xf32> to vector<1x32xf32>
    %23 = vector.broadcast %22 : vector<1x32xf32> to vector<8x32xf32>
    %24 = arith.mulf %21, %23 : vector<8x32xf32>
    %25 = vector.shape_cast %5 : vector<32xf32> to vector<1x32xf32>
    %26 = vector.broadcast %25 : vector<1x32xf32> to vector<8x32xf32>
    %27 = arith.addf %24, %26 : vector<8x32xf32>
    %28 = arith.truncf %27 : vector<8x32xf32> to vector<8x32xbf16>
    %c0_10 = arith.constant 0 : index
    %c0_11 = arith.constant 0 : index
    %29 = vector.load %arg9[%c0_10, %c0_11] : memref<32x32xbf16, #tpu.memory_space<vmem>>, vector<32x32xbf16>
    %cst_12 = arith.constant dense<0.000000e+00> : vector<8x32xf32>
    %30 = tpu.matmul %28, %29, %cst_12 {dimension_numbers = #tpu.dot_dimension_numbers<[1], [0], [0], [1], [0, 0, 1, 1], [], []>} : vector<8x32xbf16>, vector<32x32xbf16>, vector<8x32xf32> -> vector<8x32xf32>
    %c0_13 = arith.constant 0 : index
    %c0_14 = arith.constant 0 : index
    %31 = vector.load %arg3[%c0_13, %c0_14] : memref<8x32xf32, #tpu.memory_space<vmem>>, vector<8x32xf32>
    %32 = arith.addf %30, %31 : vector<8x32xf32>
    %33 = arith.truncf %32 : vector<8x32xf32> to vector<8x32xbf16>
    %cst_15 = arith.constant 0.000000e+00 : f32
    %34 = vector.broadcast %cst_15 : f32 to vector<8x32xf32>
    %35 = vector.extract_strided_slice %33 {offsets = [0, 0], sizes = [8, 8], strides = [1, 1]} : vector<8x32xbf16> to vector<8x8xbf16>
    %c0_16 = arith.constant 0 : index
    %c0_17 = arith.constant 0 : index
    %c0_18 = arith.constant 0 : index
    %36 = vector.load %arg5[%c0_16, %c0_17, %c0_18] : memref<1x32x16xbf16, #tpu.memory_space<vmem>>, vector<1x8x16xbf16>
    %37 = vector.shape_cast %36 : vector<1x8x16xbf16> to vector<8x16xbf16>
    %cst_19 = arith.constant dense<0.000000e+00> : vector<8x16xf32>
    %38 = tpu.matmul %35, %37, %cst_19 {dimension_numbers = #tpu.dot_dimension_numbers<[1], [0], [0], [1], [0, 0, 1, 1], [], []>} : vector<8x8xbf16>, vector<8x16xbf16>, vector<8x16xf32> -> vector<8x16xf32>
    %c0_20 = arith.constant 0 : index
    %c0_21 = arith.constant 0 : index
    %c0_22 = arith.constant 0 : index
    %c0_23 = arith.constant 0 : index
    %39 = vector.load %arg4[%c0_20, %c0_21, %c0_22, %c0_23] : memref<1x4x8x16xbf16, #tpu.memory_space<vmem>>, vector<1x1x8x16xbf16>
    %40 = vector.shape_cast %39 : vector<1x1x8x16xbf16> to vector<8x16xbf16>
    %41 = arith.extf %40 : vector<8x16xbf16> to vector<8x16xf32>
    %42 = arith.addf %38, %41 : vector<8x16xf32>
    %cst_24 = arith.constant dense<0xFF800000> : vector<8xf32>
    %43 = vector.multi_reduction <maximumf>, %42, %cst_24 [1] : vector<8x16xf32> to vector<8xf32>
    %44 = vector.shape_cast %43 : vector<8xf32> to vector<8x1xf32>
    %45 = vector.broadcast %44 : vector<8x1xf32> to vector<8x16xf32>
    %46 = arith.subf %42, %45 : vector<8x16xf32>
    %47 = math.exp %46 : vector<8x16xf32>
    %cst_25 = arith.constant dense<0.000000e+00> : vector<8xf32>
    %48 = vector.multi_reduction <add>, %47, %cst_25 [1] : vector<8x16xf32> to vector<8xf32>
    %49 = vector.shape_cast %48 : vector<8xf32> to vector<8x1xf32>
    %50 = tpu.reciprocal %49 {approx = true} : vector<8x1xf32> -> vector<8x1xf32>
    %51 = vector.broadcast %50 : vector<8x1xf32> to vector<8x16xf32>
    %52 = arith.mulf %47, %51 : vector<8x16xf32>
    %53 = arith.truncf %52 : vector<8x16xf32> to vector<8x16xbf16>
    %c0_26 = arith.constant 0 : index
    %c0_27 = arith.constant 0 : index
    %c0_28 = arith.constant 0 : index
    %c0_29 = arith.constant 0 : index
    %54 = vector.load %arg6[%c0_26, %c0_27, %c0_28, %c0_29] : memref<1x4x16x32xbf16, #tpu.memory_space<vmem>>, vector<1x1x16x32xbf16>
    %55 = vector.shape_cast %54 : vector<1x1x16x32xbf16> to vector<16x32xbf16>
    %cst_30 = arith.constant dense<0.000000e+00> : vector<8x32xf32>
    %56 = tpu.matmul %53, %55, %cst_30 {dimension_numbers = #tpu.dot_dimension_numbers<[1], [0], [0], [1], [0, 0, 1, 1], [], []>} : vector<8x16xbf16>, vector<16x32xbf16>, vector<8x32xf32> -> vector<8x32xf32>
    %57 = arith.addf %34, %56 : vector<8x32xf32>
    %58 = vector.extract_strided_slice %33 {offsets = [0, 8], sizes = [8, 8], strides = [1, 1]} : vector<8x32xbf16> to vector<8x8xbf16>
    %c0_31 = arith.constant 0 : index
    %c8 = arith.constant 8 : index
    %c0_32 = arith.constant 0 : index
    %59 = vector.load %arg5[%c0_31, %c8, %c0_32] : memref<1x32x16xbf16, #tpu.memory_space<vmem>>, vector<1x8x16xbf16>
    %60 = vector.shape_cast %59 : vector<1x8x16xbf16> to vector<8x16xbf16>
    %cst_33 = arith.constant dense<0.000000e+00> : vector<8x16xf32>
    %61 = tpu.matmul %58, %60, %cst_33 {dimension_numbers = #tpu.dot_dimension_numbers<[1], [0], [0], [1], [0, 0, 1, 1], [], []>} : vector<8x8xbf16>, vector<8x16xbf16>, vector<8x16xf32> -> vector<8x16xf32>
    %c0_34 = arith.constant 0 : index
    %c1 = arith.constant 1 : index
    %c0_35 = arith.constant 0 : index
    %c0_36 = arith.constant 0 : index
    %62 = vector.load %arg4[%c0_34, %c1, %c0_35, %c0_36] : memref<1x4x8x16xbf16, #tpu.memory_space<vmem>>, vector<1x1x8x16xbf16>
    %63 = vector.shape_cast %62 : vector<1x1x8x16xbf16> to vector<8x16xbf16>
    %64 = arith.extf %63 : vector<8x16xbf16> to vector<8x16xf32>
    %65 = arith.addf %61, %64 : vector<8x16xf32>
    %cst_37 = arith.constant dense<0xFF800000> : vector<8xf32>
    %66 = vector.multi_reduction <maximumf>, %65, %cst_37 [1] : vector<8x16xf32> to vector<8xf32>
    %67 = vector.shape_cast %66 : vector<8xf32> to vector<8x1xf32>
    %68 = vector.broadcast %67 : vector<8x1xf32> to vector<8x16xf32>
    %69 = arith.subf %65, %68 : vector<8x16xf32>
    %70 = math.exp %69 : vector<8x16xf32>
    %cst_38 = arith.constant dense<0.000000e+00> : vector<8xf32>
    %71 = vector.multi_reduction <add>, %70, %cst_38 [1] : vector<8x16xf32> to vector<8xf32>
    %72 = vector.shape_cast %71 : vector<8xf32> to vector<8x1xf32>
    %73 = tpu.reciprocal %72 {approx = true} : vector<8x1xf32> -> vector<8x1xf32>
    %74 = vector.broadcast %73 : vector<8x1xf32> to vector<8x16xf32>
    %75 = arith.mulf %70, %74 : vector<8x16xf32>
    %76 = arith.truncf %75 : vector<8x16xf32> to vector<8x16xbf16>
    %c0_39 = arith.constant 0 : index
    %c1_40 = arith.constant 1 : index
    %c0_41 = arith.constant 0 : index
    %c0_42 = arith.constant 0 : index
    %77 = vector.load %arg6[%c0_39, %c1_40, %c0_41, %c0_42] : memref<1x4x16x32xbf16, #tpu.memory_space<vmem>>, vector<1x1x16x32xbf16>
    %78 = vector.shape_cast %77 : vector<1x1x16x32xbf16> to vector<16x32xbf16>
    %cst_43 = arith.constant dense<0.000000e+00> : vector<8x32xf32>
    %79 = tpu.matmul %76, %78, %cst_43 {dimension_numbers = #tpu.dot_dimension_numbers<[1], [0], [0], [1], [0, 0, 1, 1], [], []>} : vector<8x16xbf16>, vector<16x32xbf16>, vector<8x32xf32> -> vector<8x32xf32>
    %80 = arith.addf %57, %79 : vector<8x32xf32>
    %81 = vector.extract_strided_slice %33 {offsets = [0, 16], sizes = [8, 8], strides = [1, 1]} : vector<8x32xbf16> to vector<8x8xbf16>
    %c0_44 = arith.constant 0 : index
    %c16 = arith.constant 16 : index
    %c0_45 = arith.constant 0 : index
    %82 = vector.load %arg5[%c0_44, %c16, %c0_45] : memref<1x32x16xbf16, #tpu.memory_space<vmem>>, vector<1x8x16xbf16>
    %83 = vector.shape_cast %82 : vector<1x8x16xbf16> to vector<8x16xbf16>
    %cst_46 = arith.constant dense<0.000000e+00> : vector<8x16xf32>
    %84 = tpu.matmul %81, %83, %cst_46 {dimension_numbers = #tpu.dot_dimension_numbers<[1], [0], [0], [1], [0, 0, 1, 1], [], []>} : vector<8x8xbf16>, vector<8x16xbf16>, vector<8x16xf32> -> vector<8x16xf32>
    %c0_47 = arith.constant 0 : index
    %c2 = arith.constant 2 : index
    %c0_48 = arith.constant 0 : index
    %c0_49 = arith.constant 0 : index
    %85 = vector.load %arg4[%c0_47, %c2, %c0_48, %c0_49] : memref<1x4x8x16xbf16, #tpu.memory_space<vmem>>, vector<1x1x8x16xbf16>
    %86 = vector.shape_cast %85 : vector<1x1x8x16xbf16> to vector<8x16xbf16>
    %87 = arith.extf %86 : vector<8x16xbf16> to vector<8x16xf32>
    %88 = arith.addf %84, %87 : vector<8x16xf32>
    %cst_50 = arith.constant dense<0xFF800000> : vector<8xf32>
    %89 = vector.multi_reduction <maximumf>, %88, %cst_50 [1] : vector<8x16xf32> to vector<8xf32>
    %90 = vector.shape_cast %89 : vector<8xf32> to vector<8x1xf32>
    %91 = vector.broadcast %90 : vector<8x1xf32> to vector<8x16xf32>
    %92 = arith.subf %88, %91 : vector<8x16xf32>
    %93 = math.exp %92 : vector<8x16xf32>
    %cst_51 = arith.constant dense<0.000000e+00> : vector<8xf32>
    %94 = vector.multi_reduction <add>, %93, %cst_51 [1] : vector<8x16xf32> to vector<8xf32>
    %95 = vector.shape_cast %94 : vector<8xf32> to vector<8x1xf32>
    %96 = tpu.reciprocal %95 {approx = true} : vector<8x1xf32> -> vector<8x1xf32>
    %97 = vector.broadcast %96 : vector<8x1xf32> to vector<8x16xf32>
    %98 = arith.mulf %93, %97 : vector<8x16xf32>
    %99 = arith.truncf %98 : vector<8x16xf32> to vector<8x16xbf16>
    %c0_52 = arith.constant 0 : index
    %c2_53 = arith.constant 2 : index
    %c0_54 = arith.constant 0 : index
    %c0_55 = arith.constant 0 : index
    %100 = vector.load %arg6[%c0_52, %c2_53, %c0_54, %c0_55] : memref<1x4x16x32xbf16, #tpu.memory_space<vmem>>, vector<1x1x16x32xbf16>
    %101 = vector.shape_cast %100 : vector<1x1x16x32xbf16> to vector<16x32xbf16>
    %cst_56 = arith.constant dense<0.000000e+00> : vector<8x32xf32>
    %102 = tpu.matmul %99, %101, %cst_56 {dimension_numbers = #tpu.dot_dimension_numbers<[1], [0], [0], [1], [0, 0, 1, 1], [], []>} : vector<8x16xbf16>, vector<16x32xbf16>, vector<8x32xf32> -> vector<8x32xf32>
    %103 = arith.addf %80, %102 : vector<8x32xf32>
    %104 = vector.extract_strided_slice %33 {offsets = [0, 24], sizes = [8, 8], strides = [1, 1]} : vector<8x32xbf16> to vector<8x8xbf16>
    %c0_57 = arith.constant 0 : index
    %c24 = arith.constant 24 : index
    %c0_58 = arith.constant 0 : index
    %105 = vector.load %arg5[%c0_57, %c24, %c0_58] : memref<1x32x16xbf16, #tpu.memory_space<vmem>>, vector<1x8x16xbf16>
    %106 = vector.shape_cast %105 : vector<1x8x16xbf16> to vector<8x16xbf16>
    %cst_59 = arith.constant dense<0.000000e+00> : vector<8x16xf32>
    %107 = tpu.matmul %104, %106, %cst_59 {dimension_numbers = #tpu.dot_dimension_numbers<[1], [0], [0], [1], [0, 0, 1, 1], [], []>} : vector<8x8xbf16>, vector<8x16xbf16>, vector<8x16xf32> -> vector<8x16xf32>
    %c0_60 = arith.constant 0 : index
    %c3 = arith.constant 3 : index
    %c0_61 = arith.constant 0 : index
    %c0_62 = arith.constant 0 : index
    %108 = vector.load %arg4[%c0_60, %c3, %c0_61, %c0_62] : memref<1x4x8x16xbf16, #tpu.memory_space<vmem>>, vector<1x1x8x16xbf16>
    %109 = vector.shape_cast %108 : vector<1x1x8x16xbf16> to vector<8x16xbf16>
    %110 = arith.extf %109 : vector<8x16xbf16> to vector<8x16xf32>
    %111 = arith.addf %107, %110 : vector<8x16xf32>
    %cst_63 = arith.constant dense<0xFF800000> : vector<8xf32>
    %112 = vector.multi_reduction <maximumf>, %111, %cst_63 [1] : vector<8x16xf32> to vector<8xf32>
    %113 = vector.shape_cast %112 : vector<8xf32> to vector<8x1xf32>
    %114 = vector.broadcast %113 : vector<8x1xf32> to vector<8x16xf32>
    %115 = arith.subf %111, %114 : vector<8x16xf32>
    %116 = math.exp %115 : vector<8x16xf32>
    %cst_64 = arith.constant dense<0.000000e+00> : vector<8xf32>
    %117 = vector.multi_reduction <add>, %116, %cst_64 [1] : vector<8x16xf32> to vector<8xf32>
    %118 = vector.shape_cast %117 : vector<8xf32> to vector<8x1xf32>
    %119 = tpu.reciprocal %118 {approx = true} : vector<8x1xf32> -> vector<8x1xf32>
    %120 = vector.broadcast %119 : vector<8x1xf32> to vector<8x16xf32>
    %121 = arith.mulf %116, %120 : vector<8x16xf32>
    %122 = arith.truncf %121 : vector<8x16xf32> to vector<8x16xbf16>
    %c0_65 = arith.constant 0 : index
    %c3_66 = arith.constant 3 : index
    %c0_67 = arith.constant 0 : index
    %c0_68 = arith.constant 0 : index
    %123 = vector.load %arg6[%c0_65, %c3_66, %c0_67, %c0_68] : memref<1x4x16x32xbf16, #tpu.memory_space<vmem>>, vector<1x1x16x32xbf16>
    %124 = vector.shape_cast %123 : vector<1x1x16x32xbf16> to vector<16x32xbf16>
    %cst_69 = arith.constant dense<0.000000e+00> : vector<8x32xf32>
    %125 = tpu.matmul %122, %124, %cst_69 {dimension_numbers = #tpu.dot_dimension_numbers<[1], [0], [0], [1], [0, 0, 1, 1], [], []>} : vector<8x16xbf16>, vector<16x32xbf16>, vector<8x32xf32> -> vector<8x32xf32>
    %126 = arith.addf %103, %125 : vector<8x32xf32>
    %127 = arith.addf %1, %126 : vector<8x32xf32>
    %c0_70 = arith.constant 0 : index
    %c0_71 = arith.constant 0 : index
    %128 = vector.load %arg10[%c0_70, %c0_71] : memref<1x32xf32, #tpu.memory_space<vmem>>, vector<1x32xf32>
    %129 = vector.broadcast %128 : vector<1x32xf32> to vector<8x32xf32>
    %130 = arith.addf %127, %129 : vector<8x32xf32>
    %c0_72 = arith.constant 0 : index
    %c0_73 = arith.constant 0 : index
    %c0_74 = arith.constant 0 : index
    %131 = vector.load %arg11[%c0_72, %c0_73, %c0_74] : memref<1x8x32xf32, #tpu.memory_space<vmem>>, vector<1x8x32xf32>
    %132 = vector.shape_cast %131 : vector<1x8x32xf32> to vector<8x32xf32>
    %133 = vector.shape_cast %130 : vector<8x32xf32> to vector<1x8x32xf32>
    tpu.vector_store %arg11[%c0_72, %c0_73, %c0_74], %133 {strides = array<i32>} : memref<1x8x32xf32, #tpu.memory_space<vmem>>, vector<1x8x32xf32>,
    return
  }
  func.func @transform_0(%arg0: i32, %arg1: i32) -> (i32, i32, i32) {
    %c0_i32 = arith.constant 0 : i32
    %c0_i32_0 = arith.constant 0 : i32
    return %arg1, %arg0, %c0_i32 : i32, i32, i32
  }
  func.func @transform_1(%arg0: i32, %arg1: i32) -> (i32, i32) {
    %c0_i32 = arith.constant 0 : i32
    %c0_i32_0 = arith.constant 0 : i32
    return %arg0, %c0_i32 : i32, i32
  }
  func.func @transform_2(%arg0: i32, %arg1: i32) -> (i32, i32, i32, i32) {
    %c0_i32 = arith.constant 0 : i32
    %c0_i32_0 = arith.constant 0 : i32
    %c0_i32_1 = arith.constant 0 : i32
    %c0_i32_2 = arith.constant 0 : i32
    return %c0_i32, %c0_i32_0, %arg0, %c0_i32_1 : i32, i32, i32, i32
  }
  func.func @transform_3(%arg0: i32, %arg1: i32) -> (i32, i32, i32) {
    %c0_i32 = arith.constant 0 : i32
    %c0_i32_0 = arith.constant 0 : i32
    %c0_i32_1 = arith.constant 0 : i32
    return %arg1, %c0_i32, %c0_i32_0 : i32, i32, i32
  }
  func.func @transform_4(%arg0: i32, %arg1: i32) -> (i32, i32, i32, i32) {
    %c0_i32 = arith.constant 0 : i32
    %c0_i32_0 = arith.constant 0 : i32
    %c0_i32_1 = arith.constant 0 : i32
    %c0_i32_2 = arith.constant 0 : i32
    return %arg1, %c0_i32, %c0_i32_0, %c0_i32_1 : i32, i32, i32, i32
  }
  func.func @transform_5(%arg0: i32, %arg1: i32) -> (i32, i32) {
    %c0_i32 = arith.constant 0 : i32
    %c0_i32_0 = arith.constant 0 : i32
    %c0_i32_1 = arith.constant 0 : i32
    return %c0_i32, %c0_i32_0 : i32, i32
  }
  func.func @transform_6(%arg0: i32, %arg1: i32) -> (i32, i32) {
    %c0_i32 = arith.constant 0 : i32
    %c0_i32_0 = arith.constant 0 : i32
    %c0_i32_1 = arith.constant 0 : i32
    return %c0_i32, %c0_i32_0 : i32, i32
  }
  func.func @transform_7(%arg0: i32, %arg1: i32) -> (i32, i32) {
    %c0_i32 = arith.constant 0 : i32
    %c0_i32_0 = arith.constant 0 : i32
    %c0_i32_1 = arith.constant 0 : i32
    return %c0_i32, %c0_i32_0 : i32, i32
  }
  func.func @transform_8(%arg0: i32, %arg1: i32) -> (i32, i32) {
    %c0_i32 = arith.constant 0 : i32
    %c0_i32_0 = arith.constant 0 : i32
    %c0_i32_1 = arith.constant 0 : i32
    return %c0_i32, %c0_i32_0 : i32, i32
  }
  func.func @transform_9(%arg0: i32, %arg1: i32) -> (i32, i32, i32) {
    %c0_i32 = arith.constant 0 : i32
    %c0_i32_0 = arith.constant 0 : i32
    return %arg1, %arg0, %c0_i32 : i32, i32, i32
  }
}

</mosaic_0001>

<bundles_post_ra>
// kernel: tpu_custom_call.1
= control target key start
LH: loop header
LB: loop body
LE: loop exit
PB: predicated region body
PF: predicated region fallthrough
CT: control target
= control target key end

     0   :  { %s1930_s0 = inlined_call_operand.vmem [shape: f32[2,8,32], index: 0, kind: input, shape index: {}]   ;;  %s1931_s1 = inlined_call_operand.hbm [shape: f32[8,32], index: 1, kind: input, shape index: {}]   ;;  %s1932_s2 = inlined_call_operand.vmem [shape: bf16[1,4,8,16], index: 2, kind: input, shape index: {}]   ;;  %s1933_s3 = inlined_call_operand.vmem [shape: bf16[2,32,16], index: 3, kind: input, shape index: {}]   ;;  %s1934_s4 = inlined_call_operand.hbm [shape: bf16[2,4,16,32], index: 4, kind: input, shape index: {}]   ;;  %s1935_s5 = inlined_call_operand.vmem [shape: f32[1,32], index: 5, kind: input, shape index: {}]   ;;  %s1936_s6 = inlined_call_operand.vmem [shape: f32[1,32], index: 6, kind: input, shape index: {}]   ;;  %s1937_s7 = inlined_call_operand.vmem [shape: bf16[32,32], index: 7, kind: input, shape index: {}]   ;;  %s1938_s8 = inlined_call_operand.vmem [shape: f32[1,32], index: 8, kind: input, shape index: {}]   ;;  %s1939_s9 = inlined_call_operand.hbm [shape: f32[2,8,32], index: 9, kind: output, shape index: {}]  }
   0x1   :  { %1951 = sst [smem:[#allocation14_spill]] %s1939_s9 }
   0x2   :  { %14 = vsyncpa [#allocation3], 0 }
   0x3   :  { %15 = vsyncpa [#allocation6], 0 }
   0x4   :  { %17 = vsyncpa [#allocation6 + $0x1], 0 }
   0x5   :  { %18 = vsyncpa [#allocation4], 0 }
   0x6   :  { %20 = vsyncpa [#allocation4 + $0x1], 0  ;;  %s1605_s30 = smov 0   ;;  %s1607_s10 = smov 0  }
   0x7   :  { %s1609_s11 = smov 0   ;;  %s1611_s12 = smov 0  }
   0x8   :  { %s1613_s13 = smov 0   ;;  %s1615_s14 = smov 0  }
   0x9 LB: > { %1952 = sst [smem:[#allocation11_spill]] %s1523_s30  ;;  %s1171_s15 = sadd.s32 4294967295, %s1543_s14   ;;  %s1543_s14 = sphi %s1615_s14, %s26_s14   ;;  %s1539_s13 = sphi %s1613_s13, %s1981_s13   ;;  %s1535_s12 = sphi %s1611_s12, %s1980_s12   ;;  %s1531_s11 = sphi %s1609_s11, %s1979_s11   ;;  %s1527_s10 = sphi %s1607_s10, %s1978_s10   ;;  %s1523_s30 = sphi %s1605_s30, %s1977_s30  }
   0xa   : > { %1953 = sst [smem:[#allocation12_spill]] %s1543_s14  ;;  %s1172_s16 = sadd.s32 4294967294, %s1543_s14  }
   0xb   : > { %p158_p0 = scmp.ne.s32.totalorder %s1531_s11, %s1527_s10  ;;  %p159_p1 = scmp.eq.s32.totalorder %s1543_s14, 0 }
   0xc   : > { %p164_p2 = scmp.ne.s32.totalorder %s1527_s10, %s1523_s30  ;;  %p1643_p3 = scmp.eq.s32.totalorder %s1171_s15, 0 }
   0xd   : > { %p274_p4 = scmp.eq.s32.totalorder %s1171_s15, 1  ;;  %p1647_p5 = por %p159_p1, %p158_p0 }
   0xe   : > { %s1954_s18 = scalar_select %p1643_p3, 1, 0 }
   0xf   : > { %p280_p6 = scmp.eq.s32.totalorder %s1172_s16, 1  ;;  %p1653_p7 = por %p1643_p3, %p164_p2 }
  0x10   : > { %p1657_p8 = por %p274_p4, %p158_p0  ;;  %p1173_p10 = scmp.ge.s32.totalorder %s1543_s14, 1 }
  0x11   : > { %s1956_s20 = scalar_select %p1653_p7, 1, 0 }
  0x12   : > { %s1957_s21 = scalar_select %p1657_p8, 1, 0 }
  0x13   : > { %p1661_p9 = por %p280_p6, %p164_p2  ;;  %p287_p11 = scmp.lt.s32.totalorder %s1543_s14, 3 }
  0x14   : > { %s1545_s24 = smov [#allocation2]   ;;  %p1316_p1 = scmp.lt.s32.totalorder %s1543_s14, 2 }
  0x15   : > { %s1958_s22 = scalar_select %p1661_p9, 1, 0 }
  0x16   : > { %p1668_p13 = pnand %p1173_p10, %p287_p11  ;;  %s302_s25 = sshll.u32 %s1545_s24, 4  ;;  %s303_s25 = int_to_ptr.vmem [resolvable:$true] %s302_s25 }
  0x17   : > { %1959 = sst [smem:[#allocation13_spill]] %s1958_s22  ;;  %p1677_p4 = pnand %p1316_p1, %p1647_p5 }
  0x18   : > { %s1960_s23 = scalar_select %p1668_p13, 1, 0 }
  0x19   : > { %p1303_p0 = pneg %p1668_p13  ;;  %s35_s28 = sadd.s32 1, %s1539_s13 }
  0x1a   : > { %s1961_s26 = scalar_select %p1677_p4, 1, 0 }
  0x1b   : > { %p1683_p2 = pnand %p1303_p0, %p1643_p3  ;;  %p1688_p6 = scmp.ge.s32.totalorder %s35_s28, 2 }
  0x1c   : > { %s350_s15 = sand.u32 1, %s1531_s11   ;;  %s1399_s19 = scalar_lea.hbm %s1931_s1, 128 }
  0x1d   : > { %s1963_s29 = scalar_select %p1688_p6, 1, 0 }
  0x1e   : > { %p1400_p5 = scmp.ne.s32.totalorder %s1931_s1, %s1399_s19  ;;  %p1401_p10 = pneg %p1683_p2 }
  0x1f   : > { %p1406_p0 = scmp.lt.u32.totalorder %s1399_s19, %s1931_s1 }
  0x20   : > { %p1402_p11 = pnand %p1401_p10, %p1400_p5 }
  0x22   : > { %p1403_p1 = pneg %p1402_p11 }
  0x24   : > { %p1408_p12 = pnand %p1406_p0, %p1403_p1 }
  0x26   : > { %1411 = shalt.err (!%p1408_p12)
}
  0x27   : > { %s1412_s9 = scalar_lea.vmem %s303_s25, 128  ;;  %p1420_p3 = scmp.lt.s32.totalorder %s303_s25, %s303_s25 }
  0x28   : > { %p1413_p9 = scmp.ne.s32.totalorder %s303_s25, %s1412_s9  ;;  %p1421_p13 = scmp.lt.s32.totalorder %s1412_s9, %s1412_s9 }
  0x2a   : > { %p1415_p8 = pnand %p1413_p9, %p1401_p10  ;;  %p1422_p4 = por %p1421_p13, %p1420_p3 }
  0x2c   : > { %p1416_p7 = pneg %p1415_p8 }
  0x2e   : > { %p1423_p6 = pnand %p1422_p4, %p1416_p7 }
  0x30   : > { %1426 = shalt.err (!%p1423_p6)
}
  0x31   : > { %1306 = dma.hbm_to_vmem [thread:$0]  (!%p1683_p2), %s1931_s1, 128, %s303_s25, [#allocation3]  }
  0x32   : > { %p1964_p9 = scmp.ne.s32.totalorder %s1963_s29, 0  ;;  %s1177_s9 = sshll.u32 %s350_s15, 5 }
  0x33   : > { %s1218_s22 = sshll.u32 %s1539_s13, 9  ;;  %s354_s19 = scalar_lea.vmem [#allocation5], %s1177_s9 }
  0x34   : > { %s1983_s28 = smov (%p1964_p9, %s35_s28), 0  ;;  %s1719_s24 = scalar_lea.hbm %s1934_s4, %s1218_s22 }
  0x35   : > { %s148_s30 = ssub.s32 %s1539_s13, %s1983_s28  ;;  %s361_s14 = sshll.u32 %s354_s19, 4  ;;  %s1726_s14 = int_to_ptr.vmem [resolvable:$true] %s361_s14 }
  0x36   : > { %p149_p3 = scmp.eq.s32.totalorder %s148_s30, 0  ;;  %s1965_s25 = sadd.s32 1, %s1531_s11 }
  0x37   : > { %s1728_s17 = scalar_lea.sflag [#allocation6], %s350_s15  ;;  %s1427_s30 = scalar_lea.hbm %s1719_s24, 512 }
  0x38   : > { %s1724_s29 = scalar_select %p149_p3, %s1531_s11, %s1965_s25  }
  0x39   : > { %p1428_p7 = scmp.ne.s32.totalorder %s1719_s24, %s1427_s30  ;;  %p1966_p8 = scmp.ne.s32.totalorder %s1961_s26, 0 }
  0x3a   : > { %s1432_s9 = scalar_lea.hbm %s1934_s4, 1024  ;;  %p1433_p2 = scmp.lt.u32.totalorder %s1719_s24, %s1934_s4 }
  0x3b   : > { %p1429_p12 = pneg %p1966_p8  ;;  %p1434_p6 = scmp.lt.u32.totalorder %s1432_s9, %s1427_s30 }
  0x3c   : > { %p1436_p10 = scmp.lt.u32.totalorder %s1427_s30, %s1719_s24 }
  0x3d   : > { %p1430_p13 = pnand %p1429_p12, %p1428_p7  ;;  %p1435_p5 = por %p1434_p6, %p1433_p2 }
  0x3f   : > { %p1431_p4 = pneg %p1430_p13  ;;  %p1437_p11 = por %p1436_p10, %p1435_p5 }
  0x41   : > { %p1438_p1 = pnand %p1437_p11, %p1431_p4 }
  0x43   : > { %1441 = shalt.err (!%p1438_p1)
}
  0x44   : > { %s1442_s15 = scalar_lea.vmem %s1726_s14, 512  ;;  %s1546_s25 = smov [#allocation5]  }
  0x45   : > { %p1443_p0 = scmp.ne.s32.totalorder %s1726_s14, %s1442_s15  ;;  %s1447_s22 = sshll.u32 %s1546_s25, 4  ;;  %s1448_s22 = int_to_ptr.vmem [resolvable:$false] %s1447_s22 }
  0x46   : > { %s1449_s27 = scalar_lea.vmem %s1448_s22, 1024  ;;  %p1450_p7 = scmp.lt.s32.totalorder %s1726_s14, %s1448_s22 }
  0x47   : > { %p1445_p9 = pnand %p1443_p0, %p1429_p12  ;;  %p1451_p13 = scmp.lt.s32.totalorder %s1449_s27, %s1442_s15 }
  0x49   : > { %p1446_p3 = pneg %p1445_p9  ;;  %p1452_p2 = por %p1451_p13, %p1450_p7 }
  0x4b   : > { %p1453_p6 = pnand %p1452_p2, %p1446_p3 }
  0x4d   : > { %1456 = shalt.err (!%p1453_p6)
}
  0x4e   : > { %s1547_s30 = smov 64   ;;  %s1548_s9 = smov 4  }
  0x4f   : > { %1310 = dma.hbm_to_vmem [thread:$0]  (!%p1966_p8), %s1719_s24, 512, %s1726_s14, %s1728_s17, %s1547_s30, %s1547_s30, %s1548_s9  }
  0x50   : > { %p1967_p12 = scmp.ne.s32.totalorder %s1960_s23, 0 }
  0x51   : > { %p1968_p4 = scmp.ne.s32.totalorder (!%p1967_p12), %s1954_s18, 0 }
  0x52   : > { %373 = sbr.rel (%p1967_p12) target bundleno = 2055 (0x807), region = 56 }
  0x59   : > { %1510 = dma.done.wait (%p1968_p4), [#allocation3], 128  }
  0x5a   : > { %1512 = vsyncadd (%p1968_p4), [#allocation3], 4294967168  ;;  %s1763_s16 = sand.u32 1, %s1527_s10   ;;  %p1969_p8 = scmp.ne.s32.totalorder %s1956_s20, 0 }
  0x5b   : > { %s1182_s19 = sshll.u32 %s1763_s16, 5  ;;  %s380_s15 = scalar_lea.sflag [#allocation6], %s1763_s16 }
  0x5c   : > { %s1767_s25 = scalar_lea.vmem [#allocation5], %s1182_s19 }
  0x5d   : > { %1514 = dma.done.wait (%p1969_p8), %s380_s15, 512  }
  0x5e   : > { %1516 = vsyncadd (%p1969_p8), %s380_s15, 4294966784  ;;  %p434_p5 = scmp.lt.s32.totalorder %s1535_s12, 1  ;;  %vm454_vm0 = vcmask 261120   ;;  %v1375_v7 = vld [vmem:[%s1937_s7] sm:$0xff]   ;;  %v1549_v8 = vmov 0.0   ;;  %vm1550_vm1 = vmmov 0  }
  0x5f   : > { %1239 = vmatprep.subr.bf16.mxu0 %v1549_v8  ;;  %1243 = vmatprep.mubr.msk.bf16.mxu0 %vm1550_vm1, %v1549_v8  ;;  %v1376_v9 = vld [vmem:[%s1937_s7 + $0x8] sm:$0xff]   ;;  %v1187_v14 = vld [vmem:[%s1935_s5] ss:$0 sm:$0xff]  ;;  %vm552_vm2 = vcmask 1043456   ;;  %vm548_vm3 = vcmask 64512   ;;  %vm596_vm4 = vcmask 130048  }
  0x60   : > { %s1775_s18 = scalar_select %p434_p5, %s1535_s12, 1  ;;  %1240 = vmatpush3.bf16.msra.mxu0 %v1375_v7  ;;  %1247 = vmatprep.subr.bf16.mxu1 %v1549_v8  ;;  %v1188_v16 = vld [vmem:[%s1936_s6] ss:$0 sm:$0xff]  ;;  %v1377_v49 = vld [vmem:[%s1767_s25 + $0x8] sm:$0xff]  }
  0x61   : > { %1241 = vmatprep.subr.bf16.mxu0 %v1549_v8  ;;  %1249 = vmatprep.mubr.msk.bf16.mxu1 %vm1550_vm1, %v1549_v8  ;;  %v488_v22 = vld [vmem:[#allocation2] sm:$0xff]  ;;  %s1552_s22 = smov 112   ;;  %s1553_s27 = smov 104  }
  0x62   : > { %s1184_s23 = sshll.u32 %s1775_s18, 3  ;;  %v546_v36 = vld [vmem:[%s1932_s2] sm:$0xff]   ;;  %s1970_s20 = sld [smem:[#allocation14_spill]] }
  0x63   : > { %s440_s14 = scalar_lea.vmem %s1930_s0, %s1184_s23  ;;  %s1219_s23 = sshll.u32 %s1775_s18, 4  ;;  %v614_v37 = vunpack.c.h.bf16 %v546_v36  ;;  %v547_v50 = vunpack.c.l.bf16 %v546_v36 }
  0x64   : > { %v1781_v0 = vld [vmem:[%s440_s14] sm:$0xff]  ;;  %1242 = vmatpush3.bf16.msra.mxu0 %v1376_v9  ;;  %s1814_s14 = scalar_lea.vmem %s1933_s3, %s1219_s23  ;;  %s1551_s18 = smov 120  }
  0x65   : > { %v455_v1 = vsel %vm454_vm0, %v1781_v0, 0.0  ;;  %1259 = vmatprep.subr.bf16.mxu0 %v1549_v8  ;;  %v545_v20 = vld [vmem:[%s1814_s14] sm:$0xf]  ;;  %v611_v24 = vld [vmem:[%s1814_s14 + $0x4] sm:$0xf]  ;;  %s1215_s23 = sshll.u32 %s1535_s12, 7 }
  0x66   : > { %456 = vadd.xlane.f32.xlu0 %v455_v1  ;;  %v554_v21 = vsel %vm552_vm2, %v545_v20, 0  ;;  %v622_v30 = vsel %vm552_vm2, %v611_v24, 0  ;;  %v777_v55 = vld [vmem:[%s1814_s14 + $0x8] sm:$0xf]  ;;  %v894_v59 = vld [vmem:[%s1814_s14 + $0xc] sm:$0xf] }
  0x67   : > { %1248 = vmatpush3.bf16.msra.mxu1 %v554_v21  ;;  %v787_v58 = vsel %vm552_vm2, %v777_v55, 0  ;;  %v904_v60 = vsel %vm552_vm2, %v894_v59, 0  ;;  %p1971_p11 = scmp.ne.s32.totalorder %s1957_s21, 0 }
  0x68   : > { %1253 = vmatprep.subr.bf16.mxu1 %v1549_v8  ;;  %s1880_s17 = scalar_lea.hbm %s1970_s20, %s1215_s23 }
  0xf3   : > { %v457_v2 = vpop.xlane.xlu0 %456 }
  0xf4   : > { %v459_v3 = vmul.f32 0.03125, %v457_v2 }
  0xf6   : > { %v460_v4 = vsub.f32 %v1781_v0, %v459_v3 }
  0xf8   : > { %v461_v5 = vmul.f32 %v460_v4, %v460_v4 }
  0xfa   : > { %v462_v6 = vsel %vm454_vm0, %v461_v5, 0.0  ;;  %v1201_v5 = vld [vmem:[%s1932_s2 + $0x8] sm:$0xff]  }
  0xfb   : > { %463 = vadd.xlane.f32.xlu0 %v462_v6  ;;  %v780_v7 = vunpack.c.l.bf16 %v1201_v5 }
 0x188   : > { %v464_v10 = vpop.xlane.xlu0 %463 }
 0x189   : > { %v465_v11 = vmul.f32 0.03125, %v464_v10 }
 0x18b   : > { %v466_v12 = vadd.f32 1e-05, %v465_v11 }
 0x18d   : > { %1381 = vrsqrt.f32 %v466_v12 }
 0x197   : > { %v1382_v13 = vpop.eup %1381 }
 0x198   : > { %v468_v15 = vmul.f32 %v1382_v13, %v460_v4 }
 0x19a   : > { %v475_v17 = vmul.f32 %v1187_v14, %v468_v15 }
 0x19c   : > { %v482_v18 = vadd.f32 %v1188_v16, %v475_v17  ;;  %v897_v16 = vunpack.c.h.bf16 %v1201_v5 }
 0x19e   : > { %v483_v19 = vpack.c.bf16 %v482_v18, %v482_v18 }
 0x1a0   : > { %1244 = vmatmul.mubr.msk.bf16.vlgmr.msra.gmra.mrb[0].mxu0 %vm454_vm0, %v483_v19 }
 0x1a1   : > { %1261 = vmatprep.mubr.msk.bf16.mxu0 %vm1550_vm1, %v1549_v8  ;;  %1260 = vmatpush3.bf16.msra.mxu0 %v1377_v49 }
 0x1a2   : > { %1271 = vmatprep.subr.bf16.mxu0 %v1549_v8 }
 0x273   : > { %v538_v23 = vpop.f32.mrb[0].mxu0 }
 0x274   : > { %v539_v25 = vadd.f32 %v538_v23, %v488_v22  ;;  %v1245_v26 = vpop.f32.mrb[1].mxu0 }
 0x275   : > { %v541_v27 = vpop.f32.mrb[2].mxu0 }
 0x276   : > { %v544_v28 = vpack.c.bf16 %v539_v25, %v539_v25  ;;  %v1246_v29 = vpop.f32.mrb[3].mxu0  ;;  %v1378_v25 = vld [vmem:[%s1767_s25] sm:$0xff]  }
 0x278   : > { %616 = vrot.lane.b32.xlu1 %v544_v28, %s1551_s18  ;;  %1250 = vmatmul.mubr.msk.bf16.vlgmr.msra.gmra.mrb[0].mxu1 %vm548_vm3, %v544_v28 }
 0x279   : > { %1254 = vmatpush3.bf16.msra.mxu1 %v622_v30  ;;  %1255 = vmatprep.mubr.msk.bf16.mxu1 %vm1550_vm1, %v1549_v8 }
 0x27a   : > { %1265 = vmatprep.subr.bf16.mxu1 %v1549_v8 }
 0x2ea   : > { %v617_v31 = vpop.permute.xlu1 %616 }
 0x2eb   : > { %1256 = vmatmul.mubr.msk.bf16.vlgmr.msra.gmra.mrb[4].mxu1 %vm548_vm3, %v617_v31 }
 0x2ec   : > { %1267 = vmatprep.mubr.msk.bf16.mxu1 %vm1550_vm1, %v1549_v8  ;;  %1266 = vmatpush3.bf16.msra.mxu1 %v1378_v25 }
 0x2ed   : > { %1277 = vmatprep.subr.bf16.mxu1 %v1549_v8 }
 0x34b   : > { %v590_v32 = vpop.f32.mrb[0].mxu1 }
 0x34c   : > { %v1251_v33 = vpop.f32.mrb[1].mxu1  ;;  %v591_v51 = vadd.f32 %v590_v32, %v547_v50 }
 0x34d   : > { %v593_v34 = vpop.f32.mrb[2].mxu1 }
 0x34e   : > { %v1252_v35 = vpop.f32.mrb[3].mxu1  ;;  %v597_v52 = vsel %vm596_vm4, %v591_v51, -inf }
 0x3be   : > { %v658_v38 = vpop.f32.mrb[4].mxu1 }
 0x3bf   : > { %v659_v39 = vadd.f32 %v658_v38, %v614_v37  ;;  %v1257_v40 = vpop.f32.mrb[5].mxu1 }
 0x3c0   : > { %v661_v41 = vpop.f32.mrb[6].mxu1  ;;  %v1379_v40 = vld [vmem:[%s1767_s25 + $0x10] sm:$0xff]  }
 0x3c1   : > { %v1258_v42 = vpop.f32.mrb[7].mxu1  ;;  %v664_v43 = vsel %vm596_vm4, %v659_v39, -inf }
 0x3c2   : > { %665 = vmax.xlane.f32.xlu1 %v664_v43 }
 0x44f   : > { %v666_v44 = vpop.xlane.xlu1 %665 }
 0x450   : > { %v667_v45 = vsub.f32 %v659_v39, %v666_v44 }
 0x452   : > { %v668_v46 = vmul.f32 1.442695, %v667_v45  ;;  %v1380_v45 = vld [vmem:[%s1767_s25 + $0x18] sm:$0xff]   ;;  %s1183_s25 = sshll.u32 %s1763_s16, 3 }
 0x453   : > { %s433_s26 = scalar_lea.vmem [#allocation7], %s1183_s25 }
 0x454   : > { %1383 = vpow2.f32 %v668_v46  ;;  %s1036_s24 = sshll.u32 %s433_s26, 4  ;;  %s1882_s24 = int_to_ptr.vmem [resolvable:$true] %s1036_s24 }
 0x455   : > { %s1457_s12 = scalar_lea.vmem %s1882_s24, 128 }
 0x456   : > { %p1458_p10 = scmp.ne.s32.totalorder %s1882_s24, %s1457_s12 }
 0x458   : > { %p1459_p1 = pnand %p1458_p10, %p1971_p11 }
 0x45a   : > { %p1460_p0 = pneg %p1459_p1 }
 0x45e   : > { %v1384_v47 = vpop.eup %1383 }
 0x45f   : > { %v670_v48 = vsel %vm596_vm4, %v1384_v47, 0.0 }
 0x460   : > { %671 = vadd.xlane.f32.xlu0 %v670_v48 }
 0x476   : > { %781 = vrot.lane.b32.xlu0 %v544_v28, %s1552_s22  ;;  %s1022_s22 = scalar_lea.sflag [#allocation4], %s1763_s16 }
 0x47a   : > { %898 = vrot.lane.b32.xlu0 %v544_v28, %s1553_s27  ;;  %s1554_s27 = smov [#allocation7]  }
 0x47b   : > { %s1461_s30 = sshll.u32 %s1554_s27, 4  ;;  %s1462_s30 = int_to_ptr.vmem [resolvable:$false] %s1461_s30 }
 0x47c   : > { %s1463_s9 = scalar_lea.vmem %s1462_s30, 256  ;;  %p1464_p9 = scmp.lt.s32.totalorder %s1882_s24, %s1462_s30 }
 0x47d   : > { %p1465_p3 = scmp.lt.s32.totalorder %s1463_s9, %s1457_s12 }
 0x47f   : > { %p1466_p7 = por %p1465_p3, %p1464_p9 }
 0x481   : > { %p1467_p13 = pnand %p1466_p7, %p1460_p0 }
 0x499   : > { %598 = vmax.xlane.f32.xlu0 %v597_v52 }
 0x4ed   : > { %v672_v53 = vpop.xlane.xlu0 %671 }
 0x4ee   : > { %1385 = vrcp.f32 %v672_v53 }
 0x4f1   : > { %v782_v61 = vpop.permute.xlu0 %781 }
 0x4f5   : > { %v899_v62 = vpop.permute.xlu0 %898 }
 0x4f8   : > { %v1386_v54 = vpop.eup %1385 }
 0x4f9   : > { %v674_v56 = vmul.f32 %v1386_v54, %v1384_v47 }
 0x4fb   : > { %v675_v57 = vpack.c.bf16 %v674_v56, %v674_v56 }
 0x4fd   : > { %1262 = vmatmul.mubr.msk.bf16.vlgmr.msra.gmra.mrb[4].mxu0 %vm596_vm4, %v675_v57 }
 0x4fe   : > { %1272 = vmatpush3.bf16.msra.mxu0 %v787_v58  ;;  %1273 = vmatprep.mubr.msk.bf16.mxu0 %vm1550_vm1, %v1549_v8 }
 0x4ff   : > { %1283 = vmatprep.subr.bf16.mxu0 %v1549_v8 }
 0x505   : > { %1274 = vmatmul.mubr.msk.bf16.vlgmr.msra.gmra.mrb[8].mxu0 %vm548_vm3, %v782_v61 }
 0x506   : > { %1284 = vmatpush3.bf16.msra.mxu0 %v904_v60  ;;  %1285 = vmatprep.mubr.msk.bf16.mxu0 %vm1550_vm1, %v1549_v8 }
 0x50d   : > { %1286 = vmatmul.mubr.msk.bf16.vlgmr.msra.gmra.mrb[12].mxu0 %vm548_vm3, %v899_v62  ;;  %v1213_v62 = vld [vmem:[%s1938_s8] ss:$0 sm:$0xff] }
 0x526   : > { %v599_v63 = vpop.xlane.xlu0 %598 }
 0x527   : > { %v600_v3 = vsub.f32 %v591_v51, %v599_v63 }
 0x529   : > { %v601_v9 = vmul.f32 1.442695, %v600_v3 }
 0x52b   : > { %1387 = vpow2.f32 %v601_v9 }
 0x535   : > { %v1388_v23 = vpop.eup %1387 }
 0x536   : > { %v603_v24 = vsel %vm596_vm4, %v1388_v23, 0.0 }
 0x5d0   : > { %v1848_v1 = vpop.f32.mrb[4].mxu0 }
 0x5d1   : > { %v1263_v2 = vpop.f32.mrb[5].mxu0 }
 0x5d2   : > { %v725_v4 = vpop.f32.mrb[6].mxu0 }
 0x5d3   : > { %v1264_v6 = vpop.f32.mrb[7].mxu0 }
 0x5d8   : > { %v823_v10 = vpop.f32.mrb[8].mxu0 }
 0x5d9   : > { %v824_v11 = vadd.f32 %v823_v10, %v780_v7  ;;  %v1275_v12 = vpop.f32.mrb[9].mxu0 }
 0x5da   : > { %v826_v13 = vpop.f32.mrb[10].mxu0 }
 0x5db   : > { %v1276_v14 = vpop.f32.mrb[11].mxu0  ;;  %v829_v15 = vsel %vm596_vm4, %v824_v11, -inf }
 0x5dc   : > { %830 = vmax.xlane.f32.xlu1 %v829_v15 }
 0x5e0   : > { %v940_v17 = vpop.f32.mrb[12].mxu0 }
 0x5e1   : > { %v941_v18 = vadd.f32 %v940_v17, %v897_v16  ;;  %v1287_v19 = vpop.f32.mrb[13].mxu0 }
 0x5e2   : > { %v943_v20 = vpop.f32.mrb[14].mxu0 }
 0x5e3   : > { %v1288_v21 = vpop.f32.mrb[15].mxu0  ;;  %v946_v22 = vsel %vm596_vm4, %v941_v18, -inf }
 0x5e4   : > { %947 = vmax.xlane.f32.xlu1 %v946_v22 }
 0x5e8   : > { %604 = vadd.xlane.f32.xlu1 %v603_v24 }
 0x669   : > { %v831_v26 = vpop.xlane.xlu1 %830 }
 0x66a   : > { %v832_v27 = vsub.f32 %v824_v11, %v831_v26 }
 0x66c   : > { %v833_v28 = vmul.f32 1.442695, %v832_v27 }
 0x66e   : > { %1389 = vpow2.f32 %v833_v28 }
 0x671   : > { %v948_v29 = vpop.xlane.xlu1 %947 }
 0x672   : > { %v949_v30 = vsub.f32 %v941_v18, %v948_v29 }
 0x674   : > { %v950_v31 = vmul.f32 1.442695, %v949_v30 }
 0x675   : > { %v605_v32 = vpop.xlane.xlu1 %604 }
 0x676   : > { %1391 = vpow2.f32 %v950_v31 }
 0x677   : > { %1393 = vrcp.f32 %v605_v32 }
 0x678   : > { %v1390_v33 = vpop.eup %1389 }
 0x679   : > { %v835_v34 = vsel %vm596_vm4, %v1390_v33, 0.0 }
 0x67a   : > { %836 = vadd.xlane.f32.xlu1 %v835_v34 }
 0x680   : > { %v1392_v35 = vpop.eup %1391 }
 0x681   : > { %v1394_v36 = vpop.eup %1393  ;;  %v952_v37 = vsel %vm596_vm4, %v1392_v35, 0.0 }
 0x682   : > { %v607_v38 = vmul.f32 %v1394_v36, %v1388_v23  ;;  %953 = vadd.xlane.f32.xlu1 %v952_v37 }
 0x684   : > { %v608_v39 = vpack.c.bf16 %v607_v38, %v607_v38 }
 0x686   : > { %1268 = vmatmul.mubr.msk.bf16.vlgmr.msra.gmra.mrb[8].mxu1 %vm596_vm4, %v608_v39 }
 0x687   : > { %1279 = vmatprep.mubr.msk.bf16.mxu1 %vm1550_vm1, %v1549_v8  ;;  %1278 = vmatpush3.bf16.msra.mxu1 %v1379_v40 }
 0x688   : > { %1289 = vmatprep.subr.bf16.mxu1 %v1549_v8 }
 0x707   : > { %v837_v41 = vpop.xlane.xlu1 %836 }
 0x708   : > { %1395 = vrcp.f32 %v837_v41 }
 0x70f   : > { %v954_v42 = vpop.xlane.xlu1 %953 }
 0x710   : > { %1397 = vrcp.f32 %v954_v42 }
 0x712   : > { %v1396_v43 = vpop.eup %1395 }
 0x713   : > { %v839_v44 = vmul.f32 %v1396_v43, %v1390_v33 }
 0x715   : > { %v840_v46 = vpack.c.bf16 %v839_v44, %v839_v44 }
 0x717   : > { %1280 = vmatmul.mubr.msk.bf16.vlgmr.msra.gmra.mrb[12].mxu1 %vm596_vm4, %v840_v46 }
 0x718   : > { %1290 = vmatpush3.bf16.msra.mxu1 %v1380_v45  ;;  %1291 = vmatprep.mubr.msk.bf16.mxu1 %vm1550_vm1, %v1549_v8 }
 0x71a   : > { %v1398_v47 = vpop.eup %1397 }
 0x71b   : > { %v956_v48 = vmul.f32 %v1398_v47, %v1392_v35 }
 0x71d   : > { %v957_v49 = vpack.c.bf16 %v956_v48, %v956_v48 }
 0x71f   : > { %1292 = vmatmul.mubr.msk.bf16.vlgmr.msra.gmra.mrb[16].mxu1 %vm596_vm4, %v957_v49 }
 0x759   : > { %v771_v50 = vpop.f32.mrb[8].mxu1 }
 0x75a   : > { %v772_v51 = vadd.f32 %v771_v50, %v1848_v1  ;;  %v1269_v52 = vpop.f32.mrb[9].mxu1 }
 0x75b   : > { %v774_v53 = vpop.f32.mrb[10].mxu1 }
 0x75c   : > { %v1270_v54 = vpop.f32.mrb[11].mxu1 }
 0x7ea   : > { %v887_v55 = vpop.f32.mrb[12].mxu1 }
 0x7eb   : > { %v893_v56 = vadd.f32 %v887_v55, %v772_v51  ;;  %v1281_v57 = vpop.f32.mrb[13].mxu1 }
 0x7ec   : > { %v890_v58 = vpop.f32.mrb[14].mxu1 }
 0x7ed   : > { %v1282_v59 = vpop.f32.mrb[15].mxu1 }
 0x7f2   : > { %v1004_v8 = vpop.f32.mrb[16].mxu1 }
 0x7f3   : > { %v1010_v60 = vadd.f32 %v1004_v8, %v893_v56  ;;  %v1293_v61 = vpop.f32.mrb[17].mxu1 }
 0x7f4   : > { %v1007_v63 = vpop.f32.mrb[18].mxu1 }
 0x7f5   : > { %v1011_v1 = vadd.f32 %v1010_v60, %v1781_v0  ;;  %v1294_v2 = vpop.f32.mrb[19].mxu1 }
 0x7f7   : > { %v1019_v3 = vadd.f32 %v1213_v62, %v1011_v1 }
 0x7f9   : > { %1020 = vst.msk [vmem:[%s433_s26] sm:$0xff] %vm454_vm0, %v1019_v3 }
 0x7fa   : > { %1470 = shalt.err (!%p1467_p13)
}
 0x7fb   : > { %s1471_s16 = scalar_lea.hbm %s1880_s17, 128  ;;  %s1475_s15 = scalar_lea.hbm %s1970_s20, 256 }
 0x7fc   : > { %p1472_p2 = scmp.ne.s32.totalorder %s1880_s17, %s1471_s16  ;;  %p1476_p4 = scmp.lt.u32.totalorder %s1880_s17, %s1970_s20 }
 0x7fd   : > { %p1477_p8 = scmp.lt.u32.totalorder %s1475_s15, %s1471_s16  ;;  %p1479_p10 = scmp.lt.u32.totalorder %s1471_s16, %s1880_s17 }
 0x7fe   : > { %p1473_p6 = pnand %p1472_p2, %p1971_p11 }
 0x7ff   : > { %p1478_p5 = por %p1477_p8, %p1476_p4 }
 0x800   : > { %p1474_p12 = pneg %p1473_p6 }
 0x801   : > { %p1480_p1 = por %p1479_p10, %p1478_p5 }
 0x803   : > { %p1481_p0 = pnand %p1480_p1, %p1474_p12 }
 0x805   : > { %1484 = shalt.err (!%p1481_p0)
}
 0x806   : > { %1301 = dma.vmem_to_hbm [thread:$0]  (%p1971_p11), %s1882_s24, 128, %s1880_s17, %s1022_s22  }
 0x807 PF: > { %s1972_s14 = sld [smem:[#allocation11_spill]]  ;;  %s1973_s18 = sld [smem:[#allocation13_spill]] }
 0x808   : > { %s1974_s12 = sld [smem:[#allocation12_spill]] }
 0x80d   : > { %s1048_s27 = sand.u32 1, %s1972_s14   ;;  %p1975_p9 = scmp.ne.s32.totalorder %s1973_s18, 0 }
 0x80e   : > { %p1976_p3 = scmp.ge.s32.totalorder %s1974_s12, 2  ;;  %s1049_s30 = scalar_lea.sflag [#allocation4], %s1048_s27 }
 0x810   : > { %p1312_p7 = pnand %p1976_p3, %p1975_p9 }
 0x812   : > { %1518 = dma.done.wait (!%p1312_p7), %s1049_s30, 128  }
 0x813   : > { %1520 = vsyncadd (!%p1312_p7), %s1049_s30, 4294967168  ;;  %s26_s14 = sadd.s32 1, %s1974_s12   ;;  %s1977_s30 = smov %s1527_s10 }
 0x814   : > { %p23_p13 = scmp.ge.s32.totalorder %s26_s14, 4   ;;  %s1978_s10 = smov %s1531_s11 }
 0x815   : > { %s1979_s11 = smov %s1724_s29  ;;  %s1980_s12 = smov %s1539_s13 }
 0x816   : > { %s1981_s13 = smov %s1983_s28  ;;  %25 = sbr.rel (!%p23_p13) target bundleno = 9 (0x9), region = 122 }
 0x81d   :  { %1054 = vsyncpa [#allocation3], 1 }
 0x81e   :  { %1056 = vsyncpa [#allocation3 + $0x1], 1 }
 0x81f   :  { %1057 = vsyncpa [#allocation6], 1 }
 0x820   :  { %1059 = vsyncpa [#allocation6 + $0x1], 1 }
 0x821   :  { %1060 = vsyncpa [#allocation4], 1 }
 0x822   :  { %1062 = vsyncpa [#allocation4 + $0x1], 1 }

</bundles_post_ra>
